<compile_context>
chip_gen: v6e
topology: v6e:2x2x1
jax: 0.10.0
libtpu: 0.0.40
codegen_flags: <defaults>
</compile_context>

<pallas_src>
import functools

import jax
import jax.numpy as jnp
from jax.experimental import pallas as pl
from jax.experimental.pallas import tpu as pltpu

_LEAKY_SLOPE = 0.01
_BN_EPS = 1e-5

# Fused (whole-slab-resident) path only for genuinely small slabs; everything else
# goes through the tiled path whose VMEM footprint is a constant.
_FUSED_VMEM_BUDGET = 4 * 1024 * 1024
# Safe on every chip (v7x: 64 MiB physical / 32 MiB default scoped VMEM).
_VMEM_LIMIT_BYTES = 32 * 1024 * 1024


# ----------------------------------------------------------------------------
# Fused path: all layers in one kernel, whole activation slab stays in VMEM.
# ----------------------------------------------------------------------------
def _fused_kernel(x_ref, *args, num_layers, inv_r):
    """x_ref: (N, C_in, L); args = (w_0, g_0, b_0, ..., w_k-1, g_k-1, b_k-1, o_ref).

    w_i: (C_out_i, C_in_i)   g_i, b_i: (C_out_i, 1)   o_ref: (N, C_out_last, L)
    Channels sit on sublanes, L on lanes -> every matmul is (Co,Ci)@(Ci,L).
    """
    o_ref = args[-1]
    n_batch = x_ref.shape[0]
    hs = [x_ref[n] for n in range(n_batch)]            # per-batch (C, L) slices
    for i in range(num_layers):
        w = args[3 * i][...]
        g = args[3 * i + 1][...]
        b = args[3 * i + 2][...]
        # 1x1 conv == matmul on the channel dim.
        ys = [jnp.dot(w, h, preferred_element_type=jnp.float32) for h in hs]
        # BatchNorm1d training statistics over batch * length (f32 accumulation).
        s = jnp.zeros((w.shape[0], 1), jnp.float32)
        sq = jnp.zeros((w.shape[0], 1), jnp.float32)
        for y in ys:
            s = s + jnp.sum(y, axis=1, keepdims=True)
            sq = sq + jnp.sum(y * y, axis=1, keepdims=True)
        mean = s * inv_r
        var = jnp.maximum(sq * inv_r - mean * mean, 0.0)
        # Fold BN affine into one scale/shift -> single FMA on the big tensor.
        scale = g * jax.lax.rsqrt(var + _BN_EPS)
        shift = b - mean * scale
        new_hs = []
        for y in ys:
            yb = y * scale + shift
            new_hs.append(jnp.where(yb > 0, yb, _LEAKY_SLOPE * yb))
        hs = new_hs
    for n in range(n_batch):
        o_ref[n] = hs[n].astype(o_ref.dtype)


def _mlp_fused(x, params):
    n, c_in, l = x.shape
    c_out = params[-1][0].shape[0]
    num_layers = len(params)

    flat = []
    in_specs = [pl.BlockSpec(x.shape, lambda: (0, 0, 0))]
    for (w, g, b) in params:
        flat += [w, g, b]
        in_specs += [
            pl.BlockSpec(w.shape, lambda: (0, 0)),
            pl.BlockSpec(g.shape, lambda: (0, 0)),
            pl.BlockSpec(b.shape, lambda: (0, 0)),
        ]

    kernel = functools.partial(
        _fused_kernel, num_layers=num_layers, inv_r=1.0 / float(n * l))
    return pl.pallas_call(
        kernel,
        out_shape=jax.ShapeDtypeStruct((n, c_out, l), jnp.float32),
        in_specs=in_specs,
        out_specs=pl.BlockSpec((n, c_out, l), lambda: (0, 0, 0)),
        compiler_params=pltpu.CompilerParams(vmem_limit_bytes=_VMEM_LIMIT_BYTES),
    )(x, *flat)


# ----------------------------------------------------------------------------
# Tiled path: one layer per call, two-phase BN, constant VMEM footprint.
# ----------------------------------------------------------------------------
def _layer_tiled_kernel(x_ref, w_ref, g_ref, b_ref, o_ref, sum_ref, ssq_ref, *, inv_r):
    """Grid = (Cout-tiles, 2 phases, N, L-tiles).

    x_ref: (C_in, tile_L)      w_ref: (tile_Co, C_in)
    g_ref/b_ref: (tile_Co, 1)  o_ref: (tile_Co, tile_L)
    sum_ref/ssq_ref: (tile_Co, 1) f32 scratch accumulators (persist across steps).
    """
    ph = pl.program_id(1)
    bi = pl.program_id(2)
    li = pl.program_id(3)

    @pl.when((ph == 0) & (bi == 0) & (li == 0))
    def _init():
        sum_ref[...] = jnp.zeros_like(sum_ref)
        ssq_ref[...] = jnp.zeros_like(ssq_ref)

    # 1x1 conv: (tile_Co, C_in) @ (C_in, tile_L) on the MXU.
    y = jnp.dot(w_ref[...], x_ref[...], preferred_element_type=jnp.float32)

    @pl.when(ph == 0)
    def _accumulate():
        sum_ref[...] += jnp.sum(y, axis=1, keepdims=True)
        ssq_ref[...] += jnp.sum(y * y, axis=1, keepdims=True)

    @pl.when(ph == 1)
    def _apply():
        mean = sum_ref[...] * inv_r
        var = jnp.maximum(ssq_ref[...] * inv_r - mean * mean, 0.0)
        scale = g_ref[...] * jax.lax.rsqrt(var + _BN_EPS)     # folded BN affine
        shift = b_ref[...] - mean * scale
        yb = y * scale + shift
        o_ref[...] = jnp.where(yb > 0, yb, _LEAKY_SLOPE * yb).astype(o_ref.dtype)


def _pick_tile_l(l):
    if l <= 1024:
        return l                       # full extent (always legal in BlockSpec)
    for t in (1024, 512, 384, 256, 128):
        if l % t == 0:
            return t
    # TODO(synk): pad L to a multiple of 128 instead of falling back to full extent.
    return l


def _pick_tile_co(c_out):
    for t in (256, 128):
        if c_out > t and c_out % t == 0:
            return t
    return c_out


def _mlp_layer_tiled(x, w, gamma, beta):
    n, c_in, l = x.shape
    c_out = w.shape[0]
    tile_l = _pick_tile_l(l)
    tile_co = _pick_tile_co(c_out)
    n_l = l // tile_l
    n_co = c_out // tile_co

    kernel = functools.partial(_layer_tiled_kernel, inv_r=1.0 / float(n * l))
    grid = (n_co, 2, n, n_l)           # (parallel Cout, phase, batch, L) — reduction last

    return pl.pallas_call(
        kernel,
        out_shape=jax.ShapeDtypeStruct((n, c_out, l), jnp.float32),
        grid_spec=pltpu.PrefetchScalarGridSpec(
            num_scalar_prefetch=0,
            grid=grid,
            in_specs=[
                pl.BlockSpec((None, c_in, tile_l), lambda co, ph, b, li: (b, 0, li)),
                pl.BlockSpec((tile_co, c_in), lambda co, ph, b, li: (co, 0)),
                pl.BlockSpec((tile_co, 1), lambda co, ph, b, li: (co, 0)),
                pl.BlockSpec((tile_co, 1), lambda co, ph, b, li: (co, 0)),
            ],
            # During phase 0 nothing is written: park the output window on block
            # (0, co, 0) so no garbage block is ever flushed; phase 1 starts on the
            # same block, writes it, then walks the (b, li) tiles.
            out_specs=pl.BlockSpec(
                (None, tile_co, tile_l),
                lambda co, ph, b, li: (b * ph, co, li * ph)),
            scratch_shapes=[
                pltpu.VMEM((tile_co, 1), jnp.float32),
                pltpu.VMEM((tile_co, 1), jnp.float32),
            ],
        ),
        compiler_params=pltpu.CompilerParams(
            dimension_semantics=("parallel", "arbitrary", "arbitrary", "arbitrary"),
            vmem_limit_bytes=_VMEM_LIMIT_BYTES),
    )(x, w, gamma, beta)


# ----------------------------------------------------------------------------
# Forward wrapper, params init, pure-JAX reference.
# ----------------------------------------------------------------------------
def _fused_vmem_estimate(n, l, channels):
    r = n * l
    peak_act = max(channels[i] + channels[i + 1] for i in range(len(channels) - 1))
    weights = sum(channels[i] * channels[i + 1] for i in range(len(channels) - 1))
    return 4 * (r * channels[0] + r * peak_act + weights + 4 * sum(channels))


@functools.partial(jax.jit, static_argnames=("force_tiled",))
def mlp_block_forward(x_ncl, params, force_tiled=False):
    """x_ncl: (N, C_in, L) float32 — same NCL layout as the PyTorch module."""
    n, c_in, l = x_ncl.shape
    channels = [c_in] + [w.shape[0] for (w, _, _) in params]
    use_fused = (not force_tiled and n <= 16
                 and _fused_vmem_estimate(n, l, channels) <= _FUSED_VMEM_BUDGET)
    if use_fused:
        return _mlp_fused(x_ncl, params)
    h = x_ncl
    for (w, g, b) in params:
        h = _mlp_layer_tiled(h, w, g, b)
    return h


def init_mlp_block_params(key, in_channel, num_neurons_list):
    """Deterministic synthetic params; Conv1d weight (out,in,1) stored as (out,in)."""
    params = []
    c_in = in_channel
    for c_out in num_neurons_list:
        key, wk, gk, bk = jax.random.split(key, 4)
        w = (jax.random.normal(wk, (c_out, c_in), jnp.float32)
             / jnp.sqrt(jnp.float32(c_in)))
        gamma = 1.0 + 0.1 * jax.random.normal(gk, (c_out, 1), jnp.float32)
        beta = 0.1 * jax.random.normal(bk, (c_out, 1), jnp.float32)
        params.append((w, gamma, beta))
        c_in = c_out
    return params


def mlp_block_reference(x, params):
    """Pure-JAX reference of the PyTorch forward (training-mode BN)."""
    h = x.astype(jnp.float32)
    for (w, g, b) in params:
        y = jnp.einsum("oc,ncl->nol", w, h, precision=jax.lax.Precision.HIGHEST)
        mean = jnp.mean(y, axis=(0, 2), keepdims=True)
        var = jnp.mean((y - mean) ** 2, axis=(0, 2), keepdims=True)
        y = (y - mean) * jax.lax.rsqrt(var + _BN_EPS) * g[None, :, :] + b[None, :, :]
        h = jnp.where(y > 0, y, _LEAKY_SLOPE * y)
    return h


if __name__ == "__main__":
    key = jax.random.PRNGKey(0)
    key, xk1, xk2, pk1, pk2 = jax.random.split(key, 5)

    in_channel = 4

    # Case 1: small shapes consistent with the module (batch=2, C_in=4, L=16).
    neurons_small = [32, 64]
    params_small = init_mlp_block_params(pk1, in_channel, neurons_small)
    x_small = jax.random.normal(xk1, (2, in_channel, 16), jnp.float32)

    out_fused = mlp_block_forward(x_small, params_small)                    # fused path
    out_tiled = mlp_block_forward(x_small, params_small, force_tiled=True)  # tiled path
    ref_small = mlp_block_reference(x_small, params_small)
    jax.block_until_ready((out_fused, out_tiled))

    assert out_fused.shape == (2, neurons_small[-1], 16), out_fused.shape
    assert out_fused.dtype == jnp.float32
    assert bool(jnp.allclose(out_fused, ref_small, atol=2e-2, rtol=2e-2))
    assert bool(jnp.allclose(out_tiled, ref_small, atol=2e-2, rtol=2e-2))

    # Case 2: longer point cloud + wider last layer so the tiled path exercises
    # multiple L tiles AND multiple Cout tiles (grid (2, 2, 2, 2) on layer 2).
    neurons_big = [32, 256]
    params_big = init_mlp_block_params(pk2, in_channel, neurons_big)
    x_big = jax.random.normal(xk2, (2, in_channel, 2048), jnp.float32)

    out_big = mlp_block_forward(x_big, params_big, force_tiled=True)
    ref_big = mlp_block_reference(x_big, params_big)
    jax.block_until_ready(out_big)

    assert out_big.shape == (2, neurons_big[-1], 2048), out_big.shape
    assert bool(jnp.allclose(out_big, ref_big, atol=2e-2, rtol=2e-2))

    print("KERNEL_OK")
</pallas_src>

<mosaic_0001>
module attributes {stable_mosaic.version = 11 : i64} {
  func.func @_fused_kernel(%arg0: memref<2x4x16xf32, #tpu.memory_space<vmem>>, %arg1: memref<32x4xf32, #tpu.memory_space<vmem>>, %arg2: memref<32x1xf32, #tpu.memory_space<vmem>>, %arg3: memref<32x1xf32, #tpu.memory_space<vmem>>, %arg4: memref<64x32xf32, #tpu.memory_space<vmem>>, %arg5: memref<64x1xf32, #tpu.memory_space<vmem>>, %arg6: memref<64x1xf32, #tpu.memory_space<vmem>>, %arg7: memref<2x64x16xf32, #tpu.memory_space<vmem>>) attributes {dimension_semantics = [], scalar_prefetch = 0 : i64, scratch_operands = 0 : i64, tpu.core_type = #tpu.core_type<tc>} {
    %c0 = arith.constant 0 : index
    %c0_0 = arith.constant 0 : index
    %c0_1 = arith.constant 0 : index
    %0 = vector.load %arg0[%c0, %c0_0, %c0_1] : memref<2x4x16xf32, #tpu.memory_space<vmem>>, vector<1x4x16xf32>
    %1 = vector.shape_cast %0 : vector<1x4x16xf32> to vector<4x16xf32>
    %c1 = arith.constant 1 : index
    %c0_2 = arith.constant 0 : index
    %c0_3 = arith.constant 0 : index
    %2 = vector.load %arg0[%c1, %c0_2, %c0_3] : memref<2x4x16xf32, #tpu.memory_space<vmem>>, vector<1x4x16xf32>
    %3 = vector.shape_cast %2 : vector<1x4x16xf32> to vector<4x16xf32>
    %c0_4 = arith.constant 0 : index
    %c0_5 = arith.constant 0 : index
    %4 = vector.load %arg1[%c0_4, %c0_5] : memref<32x4xf32, #tpu.memory_space<vmem>>, vector<32x4xf32>
    %c0_6 = arith.constant 0 : index
    %c0_7 = arith.constant 0 : index
    %5 = vector.load %arg2[%c0_6, %c0_7] : memref<32x1xf32, #tpu.memory_space<vmem>>, vector<32x1xf32>
    %c0_8 = arith.constant 0 : index
    %c0_9 = arith.constant 0 : index
    %6 = vector.load %arg3[%c0_8, %c0_9] : memref<32x1xf32, #tpu.memory_space<vmem>>, vector<32x1xf32>
    %cst = arith.constant dense<0.000000e+00> : vector<32x16xf32>
    %7 = tpu.matmul %4, %1, %cst {dimension_numbers = #tpu.dot_dimension_numbers<[1], [0], [0], [1], [0, 0, 1, 1], [], []>} : vector<32x4xf32>, vector<4x16xf32>, vector<32x16xf32> -> vector<32x16xf32>
    %cst_10 = arith.constant dense<0.000000e+00> : vector<32x16xf32>
    %8 = tpu.matmul %4, %3, %cst_10 {dimension_numbers = #tpu.dot_dimension_numbers<[1], [0], [0], [1], [0, 0, 1, 1], [], []>} : vector<32x4xf32>, vector<4x16xf32>, vector<32x16xf32> -> vector<32x16xf32>
    %cst_11 = arith.constant 0.000000e+00 : f32
    %9 = vector.broadcast %cst_11 : f32 to vector<32x1xf32>
    %cst_12 = arith.constant 0.000000e+00 : f32
    %10 = vector.broadcast %cst_12 : f32 to vector<32x1xf32>
    %cst_13 = arith.constant dense<0.000000e+00> : vector<32xf32>
    %11 = vector.multi_reduction <add>, %7, %cst_13 [1] : vector<32x16xf32> to vector<32xf32>
    %12 = vector.shape_cast %11 : vector<32xf32> to vector<32x1xf32>
    %13 = arith.addf %9, %12 : vector<32x1xf32>
    %14 = arith.mulf %7, %7 : vector<32x16xf32>
    %cst_14 = arith.constant dense<0.000000e+00> : vector<32xf32>
    %15 = vector.multi_reduction <add>, %14, %cst_14 [1] : vector<32x16xf32> to vector<32xf32>
    %16 = vector.shape_cast %15 : vector<32xf32> to vector<32x1xf32>
    %17 = arith.addf %10, %16 : vector<32x1xf32>
    %cst_15 = arith.constant dense<0.000000e+00> : vector<32xf32>
    %18 = vector.multi_reduction <add>, %8, %cst_15 [1] : vector<32x16xf32> to vector<32xf32>
    %19 = vector.shape_cast %18 : vector<32xf32> to vector<32x1xf32>
    %20 = arith.addf %13, %19 : vector<32x1xf32>
    %21 = arith.mulf %8, %8 : vector<32x16xf32>
    %cst_16 = arith.constant dense<0.000000e+00> : vector<32xf32>
    %22 = vector.multi_reduction <add>, %21, %cst_16 [1] : vector<32x16xf32> to vector<32xf32>
    %23 = vector.shape_cast %22 : vector<32xf32> to vector<32x1xf32>
    %24 = arith.addf %17, %23 : vector<32x1xf32>
    %cst_17 = arith.constant 3.125000e-02 : f32
    %25 = vector.broadcast %cst_17 : f32 to vector<32x1xf32>
    %26 = arith.mulf %20, %25 : vector<32x1xf32>
    %cst_18 = arith.constant 3.125000e-02 : f32
    %27 = vector.broadcast %cst_18 : f32 to vector<32x1xf32>
    %28 = arith.mulf %24, %27 : vector<32x1xf32>
    %29 = arith.mulf %26, %26 : vector<32x1xf32>
    %30 = arith.subf %28, %29 : vector<32x1xf32>
    %cst_19 = arith.constant 0.000000e+00 : f32
    %31 = vector.broadcast %cst_19 : f32 to vector<32x1xf32>
    %32 = arith.maximumf %30, %31 : vector<32x1xf32>
    %cst_20 = arith.constant 9.99999974E-6 : f32
    %33 = vector.broadcast %cst_20 : f32 to vector<32x1xf32>
    %34 = arith.addf %32, %33 : vector<32x1xf32>
    %35 = math.rsqrt %34 : vector<32x1xf32>
    %36 = arith.mulf %5, %35 : vector<32x1xf32>
    %37 = arith.mulf %26, %36 : vector<32x1xf32>
    %38 = arith.subf %6, %37 : vector<32x1xf32>
    %39 = vector.broadcast %36 : vector<32x1xf32> to vector<32x16xf32>
    %40 = arith.mulf %7, %39 : vector<32x16xf32>
    %41 = vector.broadcast %38 : vector<32x1xf32> to vector<32x16xf32>
    %42 = arith.addf %40, %41 : vector<32x16xf32>
    %cst_21 = arith.constant 0.000000e+00 : f32
    %43 = vector.broadcast %cst_21 : f32 to vector<32x16xf32>
    %44 = arith.cmpf ogt, %42, %43 : vector<32x16xf32>
    %cst_22 = arith.constant 0.00999999977 : f32
    %45 = vector.broadcast %cst_22 : f32 to vector<32x16xf32>
    %46 = arith.mulf %45, %42 : vector<32x16xf32>
    %47 = arith.select %44, %42, %46 : vector<32x16xi1>, vector<32x16xf32>
    %48 = vector.broadcast %36 : vector<32x1xf32> to vector<32x16xf32>
    %49 = arith.mulf %8, %48 : vector<32x16xf32>
    %50 = vector.broadcast %38 : vector<32x1xf32> to vector<32x16xf32>
    %51 = arith.addf %49, %50 : vector<32x16xf32>
    %cst_23 = arith.constant 0.000000e+00 : f32
    %52 = vector.broadcast %cst_23 : f32 to vector<32x16xf32>
    %53 = arith.cmpf ogt, %51, %52 : vector<32x16xf32>
    %cst_24 = arith.constant 0.00999999977 : f32
    %54 = vector.broadcast %cst_24 : f32 to vector<32x16xf32>
    %55 = arith.mulf %54, %51 : vector<32x16xf32>
    %56 = arith.select %53, %51, %55 : vector<32x16xi1>, vector<32x16xf32>
    %c0_25 = arith.constant 0 : index
    %c0_26 = arith.constant 0 : index
    %57 = vector.load %arg4[%c0_25, %c0_26] : memref<64x32xf32, #tpu.memory_space<vmem>>, vector<64x32xf32>
    %c0_27 = arith.constant 0 : index
    %c0_28 = arith.constant 0 : index
    %58 = vector.load %arg5[%c0_27, %c0_28] : memref<64x1xf32, #tpu.memory_space<vmem>>, vector<64x1xf32>
    %c0_29 = arith.constant 0 : index
    %c0_30 = arith.constant 0 : index
    %59 = vector.load %arg6[%c0_29, %c0_30] : memref<64x1xf32, #tpu.memory_space<vmem>>, vector<64x1xf32>
    %cst_31 = arith.constant dense<0.000000e+00> : vector<64x16xf32>
    %60 = tpu.matmul %57, %47, %cst_31 {dimension_numbers = #tpu.dot_dimension_numbers<[1], [0], [0], [1], [0, 0, 1, 1], [], []>} : vector<64x32xf32>, vector<32x16xf32>, vector<64x16xf32> -> vector<64x16xf32>
    %cst_32 = arith.constant dense<0.000000e+00> : vector<64x16xf32>
    %61 = tpu.matmul %57, %56, %cst_32 {dimension_numbers = #tpu.dot_dimension_numbers<[1], [0], [0], [1], [0, 0, 1, 1], [], []>} : vector<64x32xf32>, vector<32x16xf32>, vector<64x16xf32> -> vector<64x16xf32>
    %cst_33 = arith.constant 0.000000e+00 : f32
    %62 = vector.broadcast %cst_33 : f32 to vector<64x1xf32>
    %cst_34 = arith.constant 0.000000e+00 : f32
    %63 = vector.broadcast %cst_34 : f32 to vector<64x1xf32>
    %cst_35 = arith.constant dense<0.000000e+00> : vector<64xf32>
    %64 = vector.multi_reduction <add>, %60, %cst_35 [1] : vector<64x16xf32> to vector<64xf32>
    %65 = vector.shape_cast %64 : vector<64xf32> to vector<64x1xf32>
    %66 = arith.addf %62, %65 : vector<64x1xf32>
    %67 = arith.mulf %60, %60 : vector<64x16xf32>
    %cst_36 = arith.constant dense<0.000000e+00> : vector<64xf32>
    %68 = vector.multi_reduction <add>, %67, %cst_36 [1] : vector<64x16xf32> to vector<64xf32>
    %69 = vector.shape_cast %68 : vector<64xf32> to vector<64x1xf32>
    %70 = arith.addf %63, %69 : vector<64x1xf32>
    %cst_37 = arith.constant dense<0.000000e+00> : vector<64xf32>
    %71 = vector.multi_reduction <add>, %61, %cst_37 [1] : vector<64x16xf32> to vector<64xf32>
    %72 = vector.shape_cast %71 : vector<64xf32> to vector<64x1xf32>
    %73 = arith.addf %66, %72 : vector<64x1xf32>
    %74 = arith.mulf %61, %61 : vector<64x16xf32>
    %cst_38 = arith.constant dense<0.000000e+00> : vector<64xf32>
    %75 = vector.multi_reduction <add>, %74, %cst_38 [1] : vector<64x16xf32> to vector<64xf32>
    %76 = vector.shape_cast %75 : vector<64xf32> to vector<64x1xf32>
    %77 = arith.addf %70, %76 : vector<64x1xf32>
    %cst_39 = arith.constant 3.125000e-02 : f32
    %78 = vector.broadcast %cst_39 : f32 to vector<64x1xf32>
    %79 = arith.mulf %73, %78 : vector<64x1xf32>
    %cst_40 = arith.constant 3.125000e-02 : f32
    %80 = vector.broadcast %cst_40 : f32 to vector<64x1xf32>
    %81 = arith.mulf %77, %80 : vector<64x1xf32>
    %82 = arith.mulf %79, %79 : vector<64x1xf32>
    %83 = arith.subf %81, %82 : vector<64x1xf32>
    %cst_41 = arith.constant 0.000000e+00 : f32
    %84 = vector.broadcast %cst_41 : f32 to vector<64x1xf32>
    %85 = arith.maximumf %83, %84 : vector<64x1xf32>
    %cst_42 = arith.constant 9.99999974E-6 : f32
    %86 = vector.broadcast %cst_42 : f32 to vector<64x1xf32>
    %87 = arith.addf %85, %86 : vector<64x1xf32>
    %88 = math.rsqrt %87 : vector<64x1xf32>
    %89 = arith.mulf %58, %88 : vector<64x1xf32>
    %90 = arith.mulf %79, %89 : vector<64x1xf32>
    %91 = arith.subf %59, %90 : vector<64x1xf32>
    %92 = vector.broadcast %89 : vector<64x1xf32> to vector<64x16xf32>
    %93 = arith.mulf %60, %92 : vector<64x16xf32>
    %94 = vector.broadcast %91 : vector<64x1xf32> to vector<64x16xf32>
    %95 = arith.addf %93, %94 : vector<64x16xf32>
    %cst_43 = arith.constant 0.000000e+00 : f32
    %96 = vector.broadcast %cst_43 : f32 to vector<64x16xf32>
    %97 = arith.cmpf ogt, %95, %96 : vector<64x16xf32>
    %cst_44 = arith.constant 0.00999999977 : f32
    %98 = vector.broadcast %cst_44 : f32 to vector<64x16xf32>
    %99 = arith.mulf %98, %95 : vector<64x16xf32>
    %100 = arith.select %97, %95, %99 : vector<64x16xi1>, vector<64x16xf32>
    %101 = vector.broadcast %89 : vector<64x1xf32> to vector<64x16xf32>
    %102 = arith.mulf %61, %101 : vector<64x16xf32>
    %103 = vector.broadcast %91 : vector<64x1xf32> to vector<64x16xf32>
    %104 = arith.addf %102, %103 : vector<64x16xf32>
    %cst_45 = arith.constant 0.000000e+00 : f32
    %105 = vector.broadcast %cst_45 : f32 to vector<64x16xf32>
    %106 = arith.cmpf ogt, %104, %105 : vector<64x16xf32>
    %cst_46 = arith.constant 0.00999999977 : f32
    %107 = vector.broadcast %cst_46 : f32 to vector<64x16xf32>
    %108 = arith.mulf %107, %104 : vector<64x16xf32>
    %109 = arith.select %106, %104, %108 : vector<64x16xi1>, vector<64x16xf32>
    %c0_47 = arith.constant 0 : index
    %c0_48 = arith.constant 0 : index
    %c0_49 = arith.constant 0 : index
    %110 = vector.load %arg7[%c0_47, %c0_48, %c0_49] : memref<2x64x16xf32, #tpu.memory_space<vmem>>, vector<1x64x16xf32>
    %111 = vector.shape_cast %110 : vector<1x64x16xf32> to vector<64x16xf32>
    %112 = vector.shape_cast %100 : vector<64x16xf32> to vector<1x64x16xf32>
    tpu.vector_store %arg7[%c0_47, %c0_48, %c0_49], %112 {strides = array<i32>} : memref<2x64x16xf32, #tpu.memory_space<vmem>>, vector<1x64x16xf32>,
    %c1_50 = arith.constant 1 : index
    %c0_51 = arith.constant 0 : index
    %c0_52 = arith.constant 0 : index
    %113 = vector.load %arg7[%c1_50, %c0_51, %c0_52] : memref<2x64x16xf32, #tpu.memory_space<vmem>>, vector<1x64x16xf32>
    %114 = vector.shape_cast %113 : vector<1x64x16xf32> to vector<64x16xf32>
    %115 = vector.shape_cast %109 : vector<64x16xf32> to vector<1x64x16xf32>
    tpu.vector_store %arg7[%c1_50, %c0_51, %c0_52], %115 {strides = array<i32>} : memref<2x64x16xf32, #tpu.memory_space<vmem>>, vector<1x64x16xf32>,
    return
  }
}

</mosaic_0001>

<bundles_post_ra>
// kernel: mlp_block_forward.1
= control target key start
LH: loop header
LB: loop body
LE: loop exit
PB: predicated region body
PF: predicated region fallthrough
CT: control target
= control target key end

     0   :  { %vm54_vm0 = vcmask 1043456   ;;  %vm41_vm1 = vcmask 31744   ;;  %vm231_vm2 = vcmask 130048   ;;  %v1240_v38 = vmov 0   ;;  %s1707_s0 = inlined_call_operand.vmem [shape: f32[2,4,16], index: 0, kind: input, shape index: {}]   ;;  %s1708_s1 = inlined_call_operand.vmem [shape: f32[32,4], index: 1, kind: input, shape index: {}]   ;;  %s1709_s2 = inlined_call_operand.vmem [shape: f32[32,1], index: 2, kind: input, shape index: {}]   ;;  %s1710_s3 = inlined_call_operand.vmem [shape: f32[32,1], index: 3, kind: input, shape index: {}]   ;;  %s1711_s4 = inlined_call_operand.vmem [shape: f32[64,32], index: 4, kind: input, shape index: {}]   ;;  %s1712_s5 = inlined_call_operand.vmem [shape: f32[64,1], index: 5, kind: input, shape index: {}]   ;;  %s1713_s6 = inlined_call_operand.vmem [shape: f32[64,1], index: 6, kind: input, shape index: {}]   ;;  %s1714_s7 = inlined_call_operand.vmem [shape: f32[2,64,16], index: 7, kind: output, shape index: {}]  }
   0x1   :  { %v26_v0 = vld [vmem:[%s1707_s0] sm:$0xf]  ;;  %v30_v2 = vld [vmem:[%s1708_s1 + $0x8] sm:$0xff]  ;;  %v1088_v3 = vld [vmem:[%s1707_s0 + $0x4] sm:$0xf]  ;;  %1215 = vset.pattern.permute.xlu1 %v1240_v38  ;;  %1214 = vset.pattern.permute.xlu0 %v1240_v38  ;;  %vm448_vm3 = vcmask 261120  }
   0x2   :  { %v29_v1 = vld [vmem:[%s1708_s1] sm:$0xff]  ;;  %1157 = vmatprep.subr.msk.mxu0 %vm54_vm0, %v26_v0  ;;  %v31_v4 = vld [vmem:[%s1708_s1 + $0x10] sm:$0xff]  ;;  %1165 = vmatprep.subr.msk.mxu1 %vm54_vm0, %v1088_v3  ;;  %v32_v5 = vld [vmem:[%s1708_s1 + $0x18] sm:$0xff] }
   0x3   :  { %1159 = vmatprep.mubr.msk.f32.mxu0 %vm41_vm1, %v29_v1  ;;  %1158 = vmatpush3.msk.msra.mxu0 %vm54_vm0, %v26_v0 }
   0x4   :  { %1160 = vmatmul.mubr.msk.f32.vlgmr.msra.gmra.mxu0 %vm41_vm1, %v30_v2  ;;  %1166 = vmatpush3.msk.msra.mxu1 %vm54_vm0, %v1088_v3 }
   0x5   :  { %1162 = vmatprep.mubr.msk.f32.mxu0 %vm41_vm1, %v31_v4  ;;  %1167 = vmatprep.mubr.msk.f32.mxu1 %vm41_vm1, %v29_v1 }
   0x6   :  { %1168 = vmatmul.mubr.msk.f32.vlgmr.msra.gmra.mxu1 %vm41_vm1, %v30_v2 }
   0x7   :  { %1170 = vmatprep.mubr.msk.f32.mxu1 %vm41_vm1, %v31_v4 }
   0x8   :  { %1163 = vmatmul.mubr.msk.f32.gmra.mxu0 %vm41_vm1, %v32_v5 }
   0xa   :  { %1171 = vmatmul.mubr.msk.f32.gmra.mxu1 %vm41_vm1, %v32_v5 }
  0xc4   :  { %v1307_v6 = vpop.f32.mrf.mxu0 }
  0xc5   :  { %v235_v7 = vsel %vm231_vm2, %v1307_v6, 0.0  ;;  %v249_v8 = vmul.f32 %v1307_v6, %v1307_v6 }
  0xc6   :  { %236 = vadd.xlane.f32.xlu0 %v235_v7  ;;  %v1313_v9 = vpop.f32.mrf.mxu0  ;;  %v1315_v10 = vpop.f32.mrf.mxu1 }
  0xc7   :  { %v255_v11 = vsel %vm231_vm2, %v249_v8, 0.0  ;;  %v271_v12 = vsel %vm231_vm2, %v1315_v10, 0.0  ;;  %v232_v17 = vsel %vm231_vm2, %v1313_v9, 0.0  ;;  %v285_v20 = vmul.f32 %v1315_v10, %v1315_v10 }
  0xc8   :  { %256 = vadd.xlane.f32.xlu1 %v255_v11  ;;  %v1320_v13 = vpop.f32.mrf.mxu0  ;;  %v1330_v18 = vpop.f32.mrf.mxu1  ;;  %v248_v33 = vmul.f32 %v1313_v9, %v1313_v9 }
  0xc9   :  { %v251_v16 = vmul.f32 %v1320_v13, %v1320_v13  ;;  %v241_v22 = vsel %vm231_vm2, %v1320_v13, 0.0  ;;  %v291_v24 = vsel %vm231_vm2, %v285_v20, 0.0  ;;  %v268_v32 = vsel %vm231_vm2, %v1330_v18, 0.0 }
  0xca   :  { %272 = vadd.xlane.f32.xlu0 %v271_v12  ;;  %v1322_v14 = vpop.f32.mrf.mxu0  ;;  %v1335_v21 = vpop.f32.mrf.mxu1  ;;  %v284_v35 = vmul.f32 %v1330_v18, %v1330_v18  ;;  %v252_v36 = vsel %vm231_vm2, %v248_v33, 0.0  ;;  %v36_v33 = vld [vmem:[%s1709_s2 + $0x18] sm:$0xff] }
  0xcb   :  { %v238_v15 = vsel %vm231_vm2, %v1322_v14, 0.0  ;;  %v261_v19 = vsel %vm231_vm2, %v251_v16, 0.0  ;;  %v287_v23 = vmul.f32 %v1335_v21, %v1335_v21  ;;  %v277_v25 = vsel %vm231_vm2, %v1335_v21, 0.0 }
  0xcc   :  { %239 = vadd.xlane.f32.xlu1 %v238_v15  ;;  %v1345_v27 = vpop.f32.mrf.mxu1  ;;  %v250_v28 = vmul.f32 %v1322_v14, %v1322_v14  ;;  %v288_v37 = vsel %vm231_vm2, %v284_v35, 0.0 }
  0xcd   :  { %v297_v26 = vsel %vm231_vm2, %v287_v23, 0.0  ;;  %v274_v29 = vsel %vm231_vm2, %v1345_v27, 0.0  ;;  %v286_v31 = vmul.f32 %v1345_v27, %v1345_v27 }
  0xce   :  { %233 = vadd.xlane.f32.xlu0 %v232_v17  ;;  %v258_v30 = vsel %vm231_vm2, %v250_v28, 0.0 }
  0xcf   :  { %v294_v34 = vsel %vm231_vm2, %v286_v31, 0.0 }
  0xd0   :  { %262 = vadd.xlane.f32.xlu1 %v261_v19 }
  0xd2   :  { %242 = vadd.xlane.f32.xlu0 %v241_v22 }
  0xd4   :  { %292 = vadd.xlane.f32.xlu1 %v291_v24 }
  0xd6   :  { %278 = vadd.xlane.f32.xlu0 %v277_v25 }
  0xd8   :  { %298 = vadd.xlane.f32.xlu1 %v297_v26  ;;  %v34_v26 = vld [vmem:[%s1709_s2 + $0x8] sm:$0xff] }
  0xda   :  { %275 = vadd.xlane.f32.xlu0 %v274_v29 }
  0xdc   :  { %259 = vadd.xlane.f32.xlu1 %v258_v30 }
  0xde   :  { %269 = vadd.xlane.f32.xlu0 %v268_v32 }
  0xe0   :  { %295 = vadd.xlane.f32.xlu1 %v294_v34 }
  0xe2   :  { %253 = vadd.xlane.f32.xlu0 %v252_v36 }
  0xe4   :  { %289 = vadd.xlane.f32.xlu1 %v288_v37  ;;  %v33_v37 = vld [vmem:[%s1709_s2] sm:$0xff] }
 0x14f   :  { %v237_v39 = vpop.xlane.xlu0 %236 }
 0x151   :  { %v257_v40 = vpop.xlane.xlu1 %256 }
 0x153   :  { %v273_v41 = vpop.xlane.xlu0 %272 }
 0x154   :  { %v281_v44 = vadd.f32 %v273_v41, %v237_v39  ;;  %v38_v41 = vld [vmem:[%s1710_s3 + $0x8] sm:$0xff] }
 0x155   :  { %v240_v42 = vpop.xlane.xlu1 %239 }
 0x156   :  { %v305_v47 = vmul.f32 0.03125, %v281_v44  ;;  %v35_v44 = vld [vmem:[%s1709_s2 + $0x10] sm:$0xff] }
 0x157   :  { %v234_v43 = vpop.xlane.xlu0 %233 }
 0x158   :  { %v313_v51 = vmul.f32 %v305_v47, %v305_v47 }
 0x159   :  { %v263_v45 = vpop.xlane.xlu1 %262 }
 0x15b   :  { %v243_v46 = vpop.xlane.xlu0 %242 }
 0x15d   :  { %v293_v48 = vpop.xlane.xlu1 %292 }
 0x15e   :  { %v301_v49 = vadd.f32 %v293_v48, %v257_v40  ;;  %v40_v48 = vld [vmem:[%s1710_s3 + $0x18] sm:$0xff] }
 0x15f   :  { %v279_v50 = vpop.xlane.xlu0 %278 }
 0x160   :  { %v309_v52 = vmul.f32 0.03125, %v301_v49  ;;  %v283_v53 = vadd.f32 %v279_v50, %v243_v46  ;;  %v39_v50 = vld [vmem:[%s1710_s3 + $0x10] sm:$0xff] }
 0x161   :  { %v299_v54 = vpop.xlane.xlu1 %298 }
 0x162   :  { %v317_v55 = vsub.f32 %v309_v52, %v313_v51  ;;  %v307_v56 = vmul.f32 0.03125, %v283_v53  ;;  %v303_v57 = vadd.f32 %v299_v54, %v263_v45  ;;  %v37_v53 = vld [vmem:[%s1710_s3] sm:$0xff] }
 0x163   :  { %v276_v58 = vpop.xlane.xlu0 %275 }
 0x164   :  { %v321_v59 = vmax.f32 %v317_v55, 0.0  ;;  %v315_v60 = vmul.f32 %v307_v56, %v307_v56  ;;  %v311_v61 = vmul.f32 0.03125, %v303_v57  ;;  %v282_v3 = vadd.f32 %v276_v58, %v240_v42  ;;  %v424_v55 = vld [vmem:[%s1711_s4] sm:$0xff] }
 0x165   :  { %v260_v62 = vpop.xlane.xlu1 %259  ;;  %1181 = vmatprep.mubr.msk.f32.mxu0 %vm448_vm3, %v424_v55  ;;  %1201 = vmatprep.mubr.msk.f32.mxu1 %vm448_vm3, %v424_v55 }
 0x166   :  { %v325_v63 = vadd.f32 1e-05, %v321_v59  ;;  %v319_v0 = vsub.f32 %v311_v61, %v315_v60  ;;  %v306_v11 = vmul.f32 0.03125, %v282_v3 }
 0x167   :  { %v270_v1 = vpop.xlane.xlu0 %269 }
 0x168   :  { %1216 = vrsqrt.f32 %v325_v63  ;;  %v323_v2 = vmax.f32 %v319_v0, 0.0  ;;  %v280_v4 = vadd.f32 %v270_v1, %v234_v43  ;;  %v314_v20 = vmul.f32 %v306_v11, %v306_v11 }
 0x169   :  { %v296_v5 = vpop.xlane.xlu1 %295 }
 0x16a   :  { %v327_v7 = vadd.f32 1e-05, %v323_v2  ;;  %v302_v8 = vadd.f32 %v296_v5, %v260_v62  ;;  %v304_v12 = vmul.f32 0.03125, %v280_v4 }
 0x16b   :  { %v254_v15 = vpop.xlane.xlu0 %253 }
 0x16c   :  { %1218 = vrsqrt.f32 %v327_v7  ;;  %v310_v17 = vmul.f32 0.03125, %v302_v8  ;;  %v312_v22 = vmul.f32 %v304_v12, %v304_v12 }
 0x16d   :  { %v290_v16 = vpop.xlane.xlu1 %289 }
 0x16e   :  { %v300_v19 = vadd.f32 %v290_v16, %v254_v15  ;;  %v318_v24 = vsub.f32 %v310_v17, %v314_v20 }
 0x170   :  { %v308_v23 = vmul.f32 0.03125, %v300_v19  ;;  %v322_v30 = vmax.f32 %v318_v24, 0.0 }
 0x172   :  { %v316_v25 = vsub.f32 %v308_v23, %v312_v22  ;;  %v326_v35 = vadd.f32 1e-05, %v322_v30 }
 0x174   :  { %v320_v28 = vmax.f32 %v316_v25, 0.0 }
 0x175   :  { %v1217_v29 = vpop.eup %1216 }
 0x176   :  { %v324_v31 = vadd.f32 1e-05, %v320_v28  ;;  %v333_v32 = vmul.f32 %v1217_v29, %v34_v26 }
 0x178   :  { %1220 = vrsqrt.f32 %v324_v31  ;;  %351 = vperm.xlu1 %1215, %v333_v32   ;;  %v337_v40 = vmul.f32 %v333_v32, %v305_v47  ;;  %v425_v32 = vld [vmem:[%s1711_s4 + $0x8] sm:$0xff] }
 0x179   :  { %v1219_v34 = vpop.eup %1218  ;;  %1222 = vrsqrt.f32 %v326_v35  ;;  %v428_v35 = vld [vmem:[%s1711_s4 + $0x20] sm:$0xff] }
 0x17a   :  { %v335_v36 = vmul.f32 %v1219_v34, %v36_v33  ;;  %v341_v42 = vsub.f32 %v38_v41, %v337_v40  ;;  %v426_v33 = vld [vmem:[%s1711_s4 + $0x10] sm:$0xff]  ;;  %v427_v34 = vld [vmem:[%s1711_s4 + $0x18] sm:$0xff] }
 0x17c   :  { %361 = vperm.xlu0 %1214, %v335_v36   ;;  %v339_v46 = vmul.f32 %v335_v36, %v307_v56  ;;  %v429_v36 = vld [vmem:[%s1711_s4 + $0x28] sm:$0xff] }
 0x17e   :  { %v343_v47 = vsub.f32 %v40_v48, %v339_v46 }
 0x185   :  { %v1221_v38 = vpop.eup %1220 }
 0x186   :  { %v332_v39 = vmul.f32 %v1221_v38, %v33_v37  ;;  %v1223_v43 = vpop.eup %1222  ;;  %v430_v37 = vld [vmem:[%s1711_s4 + $0x30] sm:$0xff]  ;;  %v431_v38 = vld [vmem:[%s1711_s4 + $0x38] sm:$0xff] }
 0x187   :  { %v334_v45 = vmul.f32 %v1223_v43, %v35_v44 }
 0x188   :  { %346 = vperm.xlu1 %1215, %v332_v39   ;;  %v336_v52 = vmul.f32 %v332_v39, %v304_v12 }
 0x189   :  { %v338_v49 = vmul.f32 %v334_v45, %v306_v11 }
 0x18a   :  { %v340_v54 = vsub.f32 %v37_v53, %v336_v52 }
 0x18b   :  { %v342_v51 = vsub.f32 %v39_v50, %v338_v49 }
 0x18c   :  { %375 = vperm.xlu1 %1215, %v341_v42  }
 0x190   :  { %356 = vperm.xlu1 %1215, %v334_v45  }
 0x194   :  { %385 = vperm.xlu1 %1215, %v343_v47  }
 0x198   :  { %380 = vperm.xlu1 %1215, %v342_v51  }
 0x19c   :  { %370 = vperm.xlu1 %1215, %v340_v54  }
 0x1f3   :  { %v352_v56 = vpop.permute.xlu1 %351 }
 0x1f4   :  { %v365_v63 = vmul.f32 %v1307_v6, %v352_v56  ;;  %v405_v0 = vmul.f32 %v1315_v10, %v352_v56 }
 0x1f7   :  { %v362_v59 = vpop.permute.xlu0 %361 }
 0x1f8   :  { %v367_v61 = vmul.f32 %v1320_v13, %v362_v59  ;;  %v407_v62 = vmul.f32 %v1335_v21, %v362_v59 }
 0x203   :  { %v347_v57 = vpop.permute.xlu1 %346 }
 0x204   :  { %v364_v13 = vmul.f32 %v347_v57, %v1313_v9  ;;  %v404_v21 = vmul.f32 %v347_v57, %v1330_v18 }
 0x207   :  { %v376_v58 = vpop.permute.xlu1 %375 }
 0x208   :  { %v389_v4 = vadd.f32 %v376_v58, %v365_v63  ;;  %v409_v5 = vadd.f32 %v405_v0, %v376_v58 }
 0x20a   :  { %vm393_vm6 = vcmp.gt.f32.partialorder %v389_v4, 0.0  ;;  %v397_v19 = vmul.f32 0.01, %v389_v4  ;;  %vm413_vm7 = vcmp.gt.f32.partialorder %v409_v5, 0.0 }
 0x20b   :  { %v357_v60 = vpop.permute.xlu1 %356 }
 0x20c   :  { %v366_v7 = vmul.f32 %v357_v60, %v1322_v14  ;;  %v406_v8 = vmul.f32 %v357_v60, %v1345_v27  ;;  %v417_v14 = vmul.f32 0.01, %v409_v5  ;;  %v401_v25 = vsel %vm393_vm6, %v389_v4, %v397_v19 }
 0x20e   :  { %v421_v26 = vsel %vm413_vm7, %v409_v5, %v417_v14 }
 0x20f   :  { %v386_v1 = vpop.permute.xlu1 %385 }
 0x210   :  { %v391_v2 = vadd.f32 %v386_v1, %v367_v61  ;;  %v411_v3 = vadd.f32 %v407_v62, %v386_v1 }
 0x212   :  { %vm395_vm4 = vcmp.gt.f32.partialorder %v391_v2, 0.0  ;;  %v399_v11 = vmul.f32 0.01, %v391_v2  ;;  %vm415_vm5 = vcmp.gt.f32.partialorder %v411_v3, 0.0  ;;  %v419_v12 = vmul.f32 0.01, %v411_v3 }
 0x213   :  { %v381_v6 = vpop.permute.xlu1 %380 }
 0x214   :  { %v390_v15 = vadd.f32 %v381_v6, %v366_v7  ;;  %v410_v10 = vadd.f32 %v406_v8, %v381_v6  ;;  %v403_v16 = vsel %vm395_vm4, %v391_v2, %v399_v11  ;;  %v423_v17 = vsel %vm415_vm5, %v411_v3, %v419_v12 }
 0x215   :  { %1173 = vmatprep.subr.mxu0 %v403_v16  ;;  %1193 = vmatprep.subr.mxu1 %v423_v17 }
 0x216   :  { %1174 = vmatpush3.msra.mxu0 %v403_v16  ;;  %1194 = vmatpush3.msra.mxu1 %v423_v17  ;;  %vm394_vm8 = vcmp.gt.f32.partialorder %v390_v15, 0.0  ;;  %v398_v27 = vmul.f32 0.01, %v390_v15  ;;  %vm414_vm9 = vcmp.gt.f32.partialorder %v410_v10, 0.0  ;;  %v418_v20 = vmul.f32 0.01, %v410_v10 }
 0x217   :  { %v371_v9 = vpop.permute.xlu1 %370 }
 0x218   :  { %v388_v22 = vadd.f32 %v371_v9, %v364_v13  ;;  %v408_v18 = vadd.f32 %v404_v21, %v371_v9  ;;  %v402_v23 = vsel %vm394_vm8, %v390_v15, %v398_v27  ;;  %v422_v24 = vsel %vm414_vm9, %v410_v10, %v418_v20 }
 0x219   :  { %1175 = vmatprep.subr.mxu0 %v402_v23  ;;  %1195 = vmatprep.subr.mxu1 %v422_v24 }
 0x21a   :  { %1176 = vmatpush3.msra.mxu0 %v402_v23  ;;  %1196 = vmatpush3.msra.mxu1 %v422_v24  ;;  %vm392_vm10 = vcmp.gt.f32.partialorder %v388_v22, 0.0  ;;  %v396_v28 = vmul.f32 0.01, %v388_v22  ;;  %vm412_vm11 = vcmp.gt.f32.partialorder %v408_v18, 0.0  ;;  %v416_v29 = vmul.f32 0.01, %v408_v18 }
 0x21b   :  { %1177 = vmatprep.subr.mxu0 %v401_v25  ;;  %1197 = vmatprep.subr.mxu1 %v421_v26 }
 0x21c   :  { %1178 = vmatpush3.msra.mxu0 %v401_v25  ;;  %1198 = vmatpush3.msra.mxu1 %v421_v26  ;;  %v400_v30 = vsel %vm392_vm10, %v388_v22, %v396_v28  ;;  %v420_v31 = vsel %vm412_vm11, %v408_v18, %v416_v29 }
 0x21d   :  { %1179 = vmatprep.subr.mxu0 %v400_v30  ;;  %1199 = vmatprep.subr.mxu1 %v420_v31 }
 0x21e   :  { %1180 = vmatpush3.msra.mxu0 %v400_v30  ;;  %1200 = vmatpush3.msra.mxu1 %v420_v31 }
 0x21f   :  { %1182 = vmatmul.mubr.msk.f32.vlgmr.msra.gmra.mxu0 %vm448_vm3, %v425_v32  ;;  %1202 = vmatmul.mubr.msk.f32.vlgmr.msra.gmra.mxu1 %vm448_vm3, %v425_v32 }
 0x220   :  { %1184 = vmatprep.mubr.msk.f32.mxu0 %vm448_vm3, %v426_v33  ;;  %1204 = vmatprep.mubr.msk.f32.mxu1 %vm448_vm3, %v426_v33 }
 0x223   :  { %1185 = vmatmul.mubr.msk.f32.gmra.mxu0 %vm448_vm3, %v427_v34  ;;  %1205 = vmatmul.mubr.msk.f32.gmra.mxu1 %vm448_vm3, %v427_v34 }
 0x224   :  { %1187 = vmatprep.mubr.msk.f32.mxu0 %vm448_vm3, %v428_v35  ;;  %1207 = vmatprep.mubr.msk.f32.mxu1 %vm448_vm3, %v428_v35 }
 0x227   :  { %1188 = vmatmul.mubr.msk.f32.gmra.mxu0 %vm448_vm3, %v429_v36  ;;  %1208 = vmatmul.mubr.msk.f32.gmra.mxu1 %vm448_vm3, %v429_v36 }
 0x228   :  { %1190 = vmatprep.mubr.msk.f32.mxu0 %vm448_vm3, %v430_v37  ;;  %1210 = vmatprep.mubr.msk.f32.mxu1 %vm448_vm3, %v430_v37 }
 0x22b   :  { %1191 = vmatmul.mubr.msk.f32.gmra.mxu0 %vm448_vm3, %v431_v38  ;;  %1211 = vmatmul.mubr.msk.f32.gmra.mxu1 %vm448_vm3, %v431_v38 }
 0x2df   :  { %v1437_v39 = vpop.f32.mrf.mxu0  ;;  %v1439_v40 = vpop.f32.mrf.mxu1 }
 0x2e0   :  { %v686_v41 = vsel %vm231_vm2, %v1437_v39, 0.0  ;;  %v758_v42 = vsel %vm231_vm2, %v1439_v40, 0.0  ;;  %v716_v48 = vmul.f32 %v1437_v39, %v1437_v39  ;;  %v788_v51 = vmul.f32 %v1439_v40, %v1439_v40 }
 0x2e1   :  { %687 = vadd.xlane.f32.xlu0 %v686_v41  ;;  %v1445_v43 = vpop.f32.mrf.mxu0  ;;  %759 = vadd.xlane.f32.xlu1 %v758_v42  ;;  %v1447_v44 = vpop.f32.mrf.mxu1 }
 0x2e2   :  { %v683_v45 = vsel %vm231_vm2, %v1445_v43, 0.0  ;;  %v755_v46 = vsel %vm231_vm2, %v1447_v44, 0.0  ;;  %v715_v47 = vmul.f32 %v1445_v43, %v1445_v43  ;;  %v726_v49 = vsel %vm231_vm2, %v716_v48, 0.0 }
 0x2e3   :  { %v787_v52 = vmul.f32 %v1447_v44, %v1447_v44  ;;  %v1463_v53 = vpop.f32.mrf.mxu0  ;;  %v798_v54 = vsel %vm231_vm2, %v788_v51, 0.0  ;;  %v1469_v57 = vpop.f32.mrf.mxu1 }
 0x2e4   :  { %v723_v50 = vsel %vm231_vm2, %v715_v47, 0.0  ;;  %v692_v58 = vsel %vm231_vm2, %v1463_v53, 0.0  ;;  %v764_v61 = vsel %vm231_vm2, %v1469_v57, 0.0  ;;  %v718_v63 = vmul.f32 %v1463_v53, %v1463_v53 }
 0x2e5   :  { %684 = vadd.xlane.f32.xlu1 %v683_v45  ;;  %756 = vadd.xlane.f32.xlu0 %v755_v46  ;;  %v795_v55 = vsel %vm231_vm2, %v787_v52, 0.0  ;;  %v1467_v56 = vpop.f32.mrf.mxu0  ;;  %v1475_v60 = vpop.f32.mrf.mxu1  ;;  %v790_v3 = vmul.f32 %v1469_v57, %v1469_v57 }
 0x2e6   :  { %v689_v59 = vsel %vm231_vm2, %v1467_v56, 0.0  ;;  %v761_v62 = vsel %vm231_vm2, %v1475_v60, 0.0  ;;  %v717_v0 = vmul.f32 %v1467_v56, %v1467_v56  ;;  %v732_v1 = vsel %vm231_vm2, %v718_v63, 0.0 }
 0x2e7   :  { %v789_v4 = vmul.f32 %v1475_v60, %v1475_v60  ;;  %v1491_v5 = vpop.f32.mrf.mxu0  ;;  %v804_v7 = vsel %vm231_vm2, %v790_v3, 0.0  ;;  %v1497_v12 = vpop.f32.mrf.mxu1 }
 0x2e8   :  { %v729_v2 = vsel %vm231_vm2, %v717_v0, 0.0  ;;  %v698_v13 = vsel %vm231_vm2, %v1491_v5, 0.0  ;;  %v770_v15 = vsel %vm231_vm2, %v1497_v12, 0.0  ;;  %v720_v16 = vmul.f32 %v1491_v5, %v1491_v5 }
 0x2e9   :  { %727 = vadd.xlane.f32.xlu1 %v726_v49  ;;  %724 = vadd.xlane.f32.xlu0 %v723_v50  ;;  %v801_v8 = vsel %vm231_vm2, %v789_v4, 0.0  ;;  %v1495_v11 = vpop.f32.mrf.mxu0  ;;  %v1503_v6 = vpop.f32.mrf.mxu1  ;;  %v792_v27 = vmul.f32 %v1497_v12, %v1497_v12 }
 0x2ea   :  { %v695_v21 = vsel %vm231_vm2, %v1495_v11, 0.0  ;;  %v767_v10 = vsel %vm231_vm2, %v1503_v6, 0.0  ;;  %v719_v17 = vmul.f32 %v1495_v11, %v1495_v11  ;;  %v738_v19 = vsel %vm231_vm2, %v720_v16, 0.0 }
 0x2eb   :  { %v791_v20 = vmul.f32 %v1503_v6, %v1503_v6  ;;  %v1519_v9 = vpop.f32.mrf.mxu0  ;;  %v810_v22 = vsel %vm231_vm2, %v792_v27, 0.0  ;;  %v1525_v24 = vpop.f32.mrf.mxu1 }
 0x2ec   :  { %v735_v14 = vsel %vm231_vm2, %v719_v17, 0.0  ;;  %v704_v25 = vsel %vm231_vm2, %v1519_v9, 0.0  ;;  %v776_v30 = vsel %vm231_vm2, %v1525_v24, 0.0  ;;  %v722_v32 = vmul.f32 %v1519_v9, %v1519_v9 }
 0x2ed   :  { %799 = vadd.xlane.f32.xlu1 %v798_v54  ;;  %796 = vadd.xlane.f32.xlu0 %v795_v55  ;;  %v807_v18 = vsel %vm231_vm2, %v791_v20, 0.0  ;;  %v1523_v23 = vpop.f32.mrf.mxu0  ;;  %v1531_v28 = vpop.f32.mrf.mxu1  ;;  %v794_v36 = vmul.f32 %v1525_v24, %v1525_v24 }
 0x2ee   :  { %v701_v26 = vsel %vm231_vm2, %v1523_v23, 0.0  ;;  %v721_v29 = vmul.f32 %v1523_v23, %v1523_v23  ;;  %v773_v31 = vsel %vm231_vm2, %v1531_v28, 0.0  ;;  %v793_v33 = vmul.f32 %v1531_v28, %v1531_v28 }
 0x2ef   :  { %v744_v34 = vsel %vm231_vm2, %v722_v32, 0.0  ;;  %v816_v37 = vsel %vm231_vm2, %v794_v36, 0.0 }
 0x2f0   :  { %v741_v35 = vsel %vm231_vm2, %v721_v29, 0.0  ;;  %v813_v38 = vsel %vm231_vm2, %v793_v33, 0.0 }
 0x2f1   :  { %693 = vadd.xlane.f32.xlu1 %v692_v58  ;;  %690 = vadd.xlane.f32.xlu0 %v689_v59 }
 0x2f5   :  { %765 = vadd.xlane.f32.xlu1 %v764_v61  ;;  %762 = vadd.xlane.f32.xlu0 %v761_v62 }
 0x2f9   :  { %733 = vadd.xlane.f32.xlu1 %v732_v1  ;;  %730 = vadd.xlane.f32.xlu0 %v729_v2 }
 0x2fd   :  { %805 = vadd.xlane.f32.xlu1 %v804_v7  ;;  %802 = vadd.xlane.f32.xlu0 %v801_v8 }
 0x301   :  { %699 = vadd.xlane.f32.xlu1 %v698_v13  ;;  %696 = vadd.xlane.f32.xlu0 %v695_v21 }
 0x305   :  { %771 = vadd.xlane.f32.xlu1 %v770_v15  ;;  %768 = vadd.xlane.f32.xlu0 %v767_v10 }
 0x309   :  { %739 = vadd.xlane.f32.xlu1 %v738_v19  ;;  %736 = vadd.xlane.f32.xlu0 %v735_v14 }
 0x30d   :  { %811 = vadd.xlane.f32.xlu1 %v810_v22  ;;  %808 = vadd.xlane.f32.xlu0 %v807_v18 }
 0x311   :  { %705 = vadd.xlane.f32.xlu1 %v704_v25  ;;  %702 = vadd.xlane.f32.xlu0 %v701_v26 }
 0x315   :  { %777 = vadd.xlane.f32.xlu1 %v776_v30  ;;  %774 = vadd.xlane.f32.xlu0 %v773_v31 }
 0x319   :  { %745 = vadd.xlane.f32.xlu1 %v744_v34  ;;  %742 = vadd.xlane.f32.xlu0 %v741_v35 }
 0x31d   :  { %817 = vadd.xlane.f32.xlu1 %v816_v37  ;;  %814 = vadd.xlane.f32.xlu0 %v813_v38 }
 0x36a   :  { %v688_v41 = vpop.xlane.xlu0 %687  ;;  %v760_v42 = vpop.xlane.xlu1 %759 }
 0x36b   :  { %v780_v48 = vadd.f32 %v760_v42, %v688_v41  ;;  %v433_v41 = vld [vmem:[%s1712_s5 + $0x8] sm:$0xff]  ;;  %v432_v42 = vld [vmem:[%s1712_s5] sm:$0xff] }
 0x36d   :  { %v1549_v51 = vmul.f32 0.03125, %v780_v48 }
 0x36e   :  { %v685_v45 = vpop.xlane.xlu1 %684  ;;  %v757_v46 = vpop.xlane.xlu0 %756 }
 0x36f   :  { %v779_v47 = vadd.f32 %v757_v46, %v685_v45  ;;  %v844_v61 = vmul.f32 %v1549_v51, %v1549_v51 }
 0x371   :  { %v1551_v52 = vmul.f32 0.03125, %v779_v47 }
 0x372   :  { %v728_v49 = vpop.xlane.xlu1 %727  ;;  %v725_v50 = vpop.xlane.xlu0 %724 }
 0x373   :  { %v843_v62 = vmul.f32 %v1551_v52, %v1551_v52 }
 0x376   :  { %v800_v54 = vpop.xlane.xlu1 %799  ;;  %v797_v55 = vpop.xlane.xlu0 %796 }
 0x377   :  { %v820_v58 = vadd.f32 %v800_v54, %v728_v49  ;;  %v819_v59 = vadd.f32 %v797_v55, %v725_v50 }
 0x379   :  { %v836_v63 = vmul.f32 0.03125, %v820_v58  ;;  %v835_v0 = vmul.f32 0.03125, %v819_v59 }
 0x37a   :  { %v694_v1 = vpop.xlane.xlu1 %693  ;;  %v691_v2 = vpop.xlane.xlu0 %690 }
 0x37b   :  { %v852_v3 = vsub.f32 %v836_v63, %v844_v61  ;;  %v851_v4 = vsub.f32 %v835_v0, %v843_v62 }
 0x37d   :  { %v860_v7 = vmax.f32 %v852_v3, 0.0  ;;  %v859_v8 = vmax.f32 %v851_v4, 0.0 }
 0x37e   :  { %v766_v13 = vpop.xlane.xlu1 %765  ;;  %v763_v21 = vpop.xlane.xlu0 %762 }
 0x37f   :  { %v868_v15 = vadd.f32 1e-05, %v860_v7  ;;  %v867_v10 = vadd.f32 1e-05, %v859_v8  ;;  %v782_v16 = vadd.f32 %v766_v13, %v694_v1  ;;  %v781_v17 = vadd.f32 %v763_v21, %v691_v2 }
 0x381   :  { %1224 = vrsqrt.f32 %v868_v15  ;;  %v1557_v27 = vmul.f32 0.03125, %v782_v16  ;;  %v1559_v20 = vmul.f32 0.03125, %v781_v17 }
 0x382   :  { %1226 = vrsqrt.f32 %v867_v10  ;;  %v734_v19 = vpop.xlane.xlu1 %733  ;;  %v731_v14 = vpop.xlane.xlu0 %730 }
 0x383   :  { %v846_v29 = vmul.f32 %v1557_v27, %v1557_v27  ;;  %v845_v30 = vmul.f32 %v1559_v20, %v1559_v20 }
 0x386   :  { %v806_v22 = vpop.xlane.xlu1 %805  ;;  %v803_v18 = vpop.xlane.xlu0 %802 }
 0x387   :  { %v822_v25 = vadd.f32 %v806_v22, %v734_v19  ;;  %v821_v26 = vadd.f32 %v803_v18, %v731_v14  ;;  %v434_v22 = vld [vmem:[%s1712_s5 + $0x10] sm:$0xff]  ;;  %v435_v18 = vld [vmem:[%s1712_s5 + $0x18] sm:$0xff] }
 0x389   :  { %v838_v31 = vmul.f32 0.03125, %v822_v25  ;;  %v837_v32 = vmul.f32 0.03125, %v821_v26 }
 0x38a   :  { %v700_v33 = vpop.xlane.xlu1 %699  ;;  %v697_v34 = vpop.xlane.xlu0 %696 }
 0x38b   :  { %v854_v35 = vsub.f32 %v838_v31, %v846_v29  ;;  %v853_v36 = vsub.f32 %v837_v32, %v845_v30 }
 0x38d   :  { %v862_v37 = vmax.f32 %v854_v35, 0.0  ;;  %v861_v38 = vmax.f32 %v853_v36, 0.0 }
 0x38e   :  { %v1225_v45 = vpop.eup %1224  ;;  %v772_v46 = vpop.xlane.xlu1 %771 }
 0x38f   :  { %v769_v48 = vpop.xlane.xlu0 %768  ;;  %v1227_v47 = vpop.eup %1226  ;;  %v870_v49 = vadd.f32 1e-05, %v862_v37  ;;  %v869_v50 = vadd.f32 1e-05, %v861_v38  ;;  %v884_v54 = vmul.f32 %v1225_v45, %v433_v41  ;;  %v784_v58 = vadd.f32 %v772_v46, %v700_v33  ;;  %v440_v41 = vld [vmem:[%s1713_s6] sm:$0xff] }
 0x390   :  { %v883_v55 = vmul.f32 %v1227_v47, %v432_v42  ;;  %v783_v59 = vadd.f32 %v769_v48, %v697_v34  ;;  %v441_v42 = vld [vmem:[%s1713_s6 + $0x8] sm:$0xff] }
 0x391   :  { %1228 = vrsqrt.f32 %v870_v49  ;;  %914 = vperm.xlu1 %1215, %v884_v54   ;;  %v1571_v63 = vmul.f32 0.03125, %v784_v58  ;;  %v892_v36 = vmul.f32 %v884_v54, %v1549_v51 }
 0x392   :  { %1230 = vrsqrt.f32 %v869_v50  ;;  %909 = vperm.xlu0 %1214, %v883_v55   ;;  %v740_v61 = vpop.xlane.xlu1 %739  ;;  %v1573_v0 = vmul.f32 0.03125, %v783_v59  ;;  %v891_v35 = vmul.f32 %v883_v55, %v1551_v52 }
 0x393   :  { %v737_v62 = vpop.xlane.xlu0 %736  ;;  %v848_v7 = vmul.f32 %v1571_v63, %v1571_v63  ;;  %v900_v52 = vsub.f32 %v441_v42, %v892_v36  ;;  %v444_v36 = vld [vmem:[%s1713_s6 + $0x20] sm:$0xff] }
 0x394   :  { %v847_v8 = vmul.f32 %v1573_v0, %v1573_v0  ;;  %v899_v48 = vsub.f32 %v440_v41, %v891_v35 }
 0x396   :  { %v812_v1 = vpop.xlane.xlu1 %811 }
 0x397   :  { %v809_v2 = vpop.xlane.xlu0 %808  ;;  %v824_v3 = vadd.f32 %v812_v1, %v740_v61 }
 0x398   :  { %v823_v4 = vadd.f32 %v809_v2, %v737_v62 }
 0x399   :  { %v840_v13 = vmul.f32 0.03125, %v824_v3  ;;  %v437_v3 = vld [vmem:[%s1712_s5 + $0x28] sm:$0xff] }
 0x39a   :  { %v839_v21 = vmul.f32 0.03125, %v823_v4  ;;  %v706_v15 = vpop.xlane.xlu1 %705 }
 0x39b   :  { %v703_v10 = vpop.xlane.xlu0 %702  ;;  %v856_v16 = vsub.f32 %v840_v13, %v848_v7 }
 0x39c   :  { %v855_v17 = vsub.f32 %v839_v21, %v847_v8  ;;  %v436_v8 = vld [vmem:[%s1712_s5 + $0x20] sm:$0xff] }
 0x39d   :  { %v864_v19 = vmax.f32 %v856_v16, 0.0 }
 0x39e   :  { %v863_v14 = vmax.f32 %v855_v17, 0.0  ;;  %v1229_v25 = vpop.eup %1228  ;;  %v778_v26 = vpop.xlane.xlu1 %777 }
 0x39f   :  { %v775_v29 = vpop.xlane.xlu0 %774  ;;  %v1231_v30 = vpop.eup %1230  ;;  %v872_v31 = vadd.f32 1e-05, %v864_v19  ;;  %v886_v34 = vmul.f32 %v1229_v25, %v435_v18  ;;  %v786_v37 = vadd.f32 %v778_v26, %v706_v15  ;;  %v442_v18 = vld [vmem:[%s1713_s6 + $0x10] sm:$0xff] }
 0x3a0   :  { %v871_v32 = vadd.f32 1e-05, %v863_v14  ;;  %v885_v33 = vmul.f32 %v1231_v30, %v434_v22  ;;  %v785_v38 = vadd.f32 %v775_v29, %v703_v10  ;;  %v443_v22 = vld [vmem:[%s1713_s6 + $0x18] sm:$0xff] }
 0x3a1   :  { %1232 = vrsqrt.f32 %v872_v31  ;;  %924 = vperm.xlu0 %1214, %v886_v34   ;;  %v834_v47 = vmul.f32 0.03125, %v786_v37  ;;  %v894_v17 = vmul.f32 %v886_v34, %v1557_v27  ;;  %v439_v27 = vld [vmem:[%s1712_s5 + $0x38] sm:$0xff]  ;;  %v445_v34 = vld [vmem:[%s1713_s6 + $0x28] sm:$0xff] }
 0x3a2   :  { %1234 = vrsqrt.f32 %v871_v32  ;;  %919 = vperm.xlu1 %1215, %v885_v33   ;;  %v746_v45 = vpop.xlane.xlu1 %745  ;;  %v833_v51 = vmul.f32 0.03125, %v785_v38  ;;  %v893_v14 = vmul.f32 %v885_v33, %v1559_v20  ;;  %v438_v20 = vld [vmem:[%s1712_s5 + $0x30] sm:$0xff] }
 0x3a3   :  { %v743_v46 = vpop.xlane.xlu0 %742  ;;  %v850_v58 = vmul.f32 %v834_v47, %v834_v47  ;;  %v902_v25 = vsub.f32 %v443_v22, %v894_v17 }
 0x3a4   :  { %v849_v59 = vmul.f32 %v833_v51, %v833_v51  ;;  %v901_v26 = vsub.f32 %v442_v18, %v893_v14 }
 0x3a5   :  { %962 = vperm.xlu0 %1214, %v900_v52  }
 0x3a6   :  { %957 = vperm.xlu1 %1215, %v899_v48   ;;  %v818_v49 = vpop.xlane.xlu1 %817 }
 0x3a7   :  { %v815_v50 = vpop.xlane.xlu0 %814  ;;  %v826_v54 = vadd.f32 %v818_v49, %v746_v45  ;;  %v446_v45 = vld [vmem:[%s1713_s6 + $0x30] sm:$0xff] }
 0x3a8   :  { %v825_v55 = vadd.f32 %v815_v50, %v743_v46 }
 0x3a9   :  { %v842_v61 = vmul.f32 0.03125, %v826_v54 }
 0x3aa   :  { %v841_v62 = vmul.f32 0.03125, %v825_v55 }
 0x3ab   :  { %v858_v1 = vsub.f32 %v842_v61, %v850_v58 }
 0x3ac   :  { %v857_v2 = vsub.f32 %v841_v62, %v849_v59 }
 0x3ad   :  { %v866_v4 = vmax.f32 %v858_v1, 0.0 }
 0x3ae   :  { %v865_v7 = vmax.f32 %v857_v2, 0.0  ;;  %v1233_v13 = vpop.eup %1232 }
 0x3af   :  { %v1235_v21 = vpop.eup %1234  ;;  %v874_v15 = vadd.f32 1e-05, %v866_v4  ;;  %v888_v16 = vmul.f32 %v1233_v13, %v437_v3 }
 0x3b0   :  { %v873_v10 = vadd.f32 1e-05, %v865_v7  ;;  %v887_v19 = vmul.f32 %v1235_v21, %v436_v8 }
 0x3b1   :  { %1236 = vrsqrt.f32 %v874_v15  ;;  %934 = vperm.xlu0 %1214, %v888_v16   ;;  %v896_v32 = vmul.f32 %v888_v16, %v1571_v63  ;;  %v447_v63 = vld [vmem:[%s1713_s6 + $0x38] sm:$0xff] }
 0x3b2   :  { %1238 = vrsqrt.f32 %v873_v10  ;;  %929 = vperm.xlu1 %1215, %v887_v19   ;;  %v895_v35 = vmul.f32 %v887_v19, %v1573_v0 }
 0x3b3   :  { %v904_v37 = vsub.f32 %v445_v34, %v896_v32 }
 0x3b4   :  { %v903_v41 = vsub.f32 %v444_v36, %v895_v35 }
 0x3b5   :  { %972 = vperm.xlu0 %1214, %v902_v25  }
 0x3b6   :  { %967 = vperm.xlu1 %1215, %v901_v26  }
 0x3be   :  { %v1237_v29 = vpop.eup %1236 }
 0x3bf   :  { %v1239_v30 = vpop.eup %1238  ;;  %v890_v31 = vmul.f32 %v1237_v29, %v439_v27 }
 0x3c0   :  { %v889_v33 = vmul.f32 %v1239_v30, %v438_v20 }
 0x3c1   :  { %944 = vperm.xlu0 %1214, %v890_v31   ;;  %v898_v38 = vmul.f32 %v890_v31, %v834_v47 }
 0x3c2   :  { %939 = vperm.xlu1 %1215, %v889_v33   ;;  %v897_v42 = vmul.f32 %v889_v33, %v833_v51 }
 0x3c3   :  { %v906_v0 = vsub.f32 %v447_v63, %v898_v38 }
 0x3c4   :  { %v905_v46 = vsub.f32 %v446_v45, %v897_v42 }
 0x3c5   :  { %982 = vperm.xlu0 %1214, %v904_v37  }
 0x3c6   :  { %977 = vperm.xlu1 %1215, %v903_v41  }
 0x3c9   :  { %992 = vperm.xlu0 %1214, %v906_v0  }
 0x3ca   :  { %987 = vperm.xlu1 %1215, %v905_v46  }
 0x40c   :  { %v915_v48 = vpop.permute.xlu1 %914 }
 0x40d   :  { %v910_v52 = vpop.permute.xlu0 %909  ;;  %v948_v50 = vmul.f32 %v1437_v39, %v915_v48  ;;  %v1028_v54 = vmul.f32 %v1439_v40, %v915_v48 }
 0x40e   :  { %v947_v51 = vmul.f32 %v910_v52, %v1445_v43  ;;  %v1027_v55 = vmul.f32 %v910_v52, %v1447_v44 }
 0x41c   :  { %v925_v47 = vpop.permute.xlu0 %924 }
 0x41d   :  { %v920_v49 = vpop.permute.xlu1 %919  ;;  %v950_v15 = vmul.f32 %v1463_v53, %v925_v47  ;;  %v1030_v10 = vmul.f32 %v1469_v57, %v925_v47 }
 0x41e   :  { %v949_v16 = vmul.f32 %v920_v49, %v1467_v56  ;;  %v1029_v17 = vmul.f32 %v920_v49, %v1475_v60 }
 0x420   :  { %v963_v59 = vpop.permute.xlu0 %962 }
 0x421   :  { %v958_v58 = vpop.permute.xlu1 %957  ;;  %v996_v1 = vadd.f32 %v963_v59, %v948_v50  ;;  %v1036_v2 = vadd.f32 %v1028_v54, %v963_v59 }
 0x422   :  { %v995_v61 = vadd.f32 %v958_v58, %v947_v51  ;;  %v1035_v62 = vadd.f32 %v1027_v55, %v958_v58 }
 0x423   :  { %vm1004_vm14 = vcmp.gt.f32.partialorder %v996_v1, 0.0  ;;  %v1012_v7 = vmul.f32 0.01, %v996_v1  ;;  %vm1044_vm15 = vcmp.gt.f32.partialorder %v1036_v2, 0.0  ;;  %v1052_v39 = vmul.f32 0.01, %v1036_v2 }
 0x424   :  { %vm1003_vm12 = vcmp.gt.f32.partialorder %v995_v61, 0.0  ;;  %v1011_v3 = vmul.f32 0.01, %v995_v61  ;;  %vm1043_vm13 = vcmp.gt.f32.partialorder %v1035_v62, 0.0  ;;  %v1051_v4 = vmul.f32 0.01, %v1035_v62 }
 0x425   :  { %v1020_v43 = vsel %vm1004_vm14, %v996_v1, %v1012_v7  ;;  %v1060_v44 = vsel %vm1044_vm15, %v1036_v2, %v1052_v39 }
 0x426   :  { %v1019_v8 = vsel %vm1003_vm12, %v995_v61, %v1011_v3  ;;  %v1059_v40 = vsel %vm1043_vm13, %v1035_v62, %v1051_v4  ;;  %1068 = vst.msk [vmem:[%s1714_s7 + $0x8] sm:$0xff] %vm231_vm2, %v1020_v43  ;;  %1116 = vst.msk [vmem:[%s1714_s7 + $0x48] sm:$0xff] %vm231_vm2, %v1060_v44 }
 0x427   :  { %1067 = vst.msk [vmem:[%s1714_s7] sm:$0xff] %vm231_vm2, %v1019_v8  ;;  %1115 = vst.msk [vmem:[%s1714_s7 + $0x40] sm:$0xff] %vm231_vm2, %v1059_v40 }
 0x42c   :  { %v935_v13 = vpop.permute.xlu0 %934 }
 0x42d   :  { %v930_v21 = vpop.permute.xlu1 %929  ;;  %v952_v33 = vmul.f32 %v1491_v5, %v935_v13  ;;  %v1032_v34 = vmul.f32 %v1497_v12, %v935_v13 }
 0x42e   :  { %v951_v35 = vmul.f32 %v930_v21, %v1495_v11  ;;  %v1031_v36 = vmul.f32 %v930_v21, %v1503_v6 }
 0x430   :  { %v973_v19 = vpop.permute.xlu0 %972 }
 0x431   :  { %v968_v14 = vpop.permute.xlu1 %967  ;;  %v998_v22 = vadd.f32 %v973_v19, %v950_v15  ;;  %v1038_v18 = vadd.f32 %v1030_v10, %v973_v19 }
 0x432   :  { %v997_v25 = vadd.f32 %v968_v14, %v949_v16  ;;  %v1037_v26 = vadd.f32 %v1029_v17, %v968_v14 }
 0x433   :  { %vm1006_vm0 = vcmp.gt.f32.partialorder %v998_v22, 0.0  ;;  %v1014_v27 = vmul.f32 0.01, %v998_v22  ;;  %vm1046_vm1 = vcmp.gt.f32.partialorder %v1038_v18, 0.0  ;;  %v1054_v20 = vmul.f32 0.01, %v1038_v18 }
 0x434   :  { %vm1005_vm3 = vcmp.gt.f32.partialorder %v997_v25, 0.0  ;;  %v1013_v29 = vmul.f32 0.01, %v997_v25  ;;  %vm1045_vm4 = vcmp.gt.f32.partialorder %v1037_v26, 0.0  ;;  %v1053_v53 = vmul.f32 0.01, %v1037_v26 }
 0x435   :  { %v1022_v30 = vsel %vm1006_vm0, %v998_v22, %v1014_v27  ;;  %v1062_v57 = vsel %vm1046_vm1, %v1038_v18, %v1054_v20 }
 0x436   :  { %v1021_v31 = vsel %vm1005_vm3, %v997_v25, %v1013_v29  ;;  %v1061_v56 = vsel %vm1045_vm4, %v1037_v26, %v1053_v53  ;;  %1070 = vst.msk [vmem:[%s1714_s7 + $0x18] sm:$0xff] %vm231_vm2, %v1022_v30  ;;  %1118 = vst.msk [vmem:[%s1714_s7 + $0x58] sm:$0xff] %vm231_vm2, %v1062_v57 }
 0x437   :  { %1069 = vst.msk [vmem:[%s1714_s7 + $0x10] sm:$0xff] %vm231_vm2, %v1021_v31  ;;  %1117 = vst.msk [vmem:[%s1714_s7 + $0x50] sm:$0xff] %vm231_vm2, %v1061_v56 }
 0x43c   :  { %v945_v60 = vpop.permute.xlu0 %944 }
 0x43d   :  { %v940_v32 = vpop.permute.xlu1 %939  ;;  %v954_v38 = vmul.f32 %v1519_v9, %v945_v60  ;;  %v1034_v41 = vmul.f32 %v1525_v24, %v945_v60 }
 0x43e   :  { %v953_v0 = vmul.f32 %v940_v32, %v1523_v23  ;;  %v1033_v46 = vmul.f32 %v940_v32, %v1531_v28 }
 0x440   :  { %v983_v37 = vpop.permute.xlu0 %982 }
 0x441   :  { %v978_v63 = vpop.permute.xlu1 %977  ;;  %v1000_v42 = vadd.f32 %v983_v37, %v952_v33  ;;  %v1040_v45 = vadd.f32 %v1032_v34, %v983_v37 }
 0x442   :  { %v999_v48 = vadd.f32 %v978_v63, %v951_v35  ;;  %v1039_v5 = vadd.f32 %v1031_v36, %v978_v63 }
 0x443   :  { %vm1008_vm5 = vcmp.gt.f32.partialorder %v1000_v42, 0.0  ;;  %v1016_v12 = vmul.f32 0.01, %v1000_v42  ;;  %vm1048_vm6 = vcmp.gt.f32.partialorder %v1040_v45, 0.0  ;;  %v1056_v11 = vmul.f32 0.01, %v1040_v45 }
 0x444   :  { %vm1007_vm7 = vcmp.gt.f32.partialorder %v999_v48, 0.0  ;;  %v1015_v6 = vmul.f32 0.01, %v999_v48  ;;  %vm1047_vm8 = vcmp.gt.f32.partialorder %v1039_v5, 0.0  ;;  %v1055_v52 = vmul.f32 0.01, %v1039_v5  ;;  %v993_v9 = vpop.permute.xlu0 %992 }
 0x445   :  { %v1024_v49 = vsel %vm1008_vm5, %v1000_v42, %v1016_v12  ;;  %v1064_v24 = vsel %vm1048_vm6, %v1040_v45, %v1056_v11  ;;  %v988_v47 = vpop.permute.xlu1 %987  ;;  %v1002_v50 = vadd.f32 %v993_v9, %v954_v38  ;;  %v1042_v54 = vadd.f32 %v1034_v41, %v993_v9 }
 0x446   :  { %v1023_v51 = vsel %vm1007_vm7, %v999_v48, %v1015_v6  ;;  %v1063_v23 = vsel %vm1047_vm8, %v1039_v5, %v1055_v52  ;;  %1072 = vst.msk [vmem:[%s1714_s7 + $0x28] sm:$0xff] %vm231_vm2, %v1024_v49  ;;  %1120 = vst.msk [vmem:[%s1714_s7 + $0x68] sm:$0xff] %vm231_vm2, %v1064_v24  ;;  %v1001_v28 = vadd.f32 %v988_v47, %v953_v0 }
 0x447   :  { %v1041_v55 = vadd.f32 %v1033_v46, %v988_v47  ;;  %1071 = vst.msk [vmem:[%s1714_s7 + $0x20] sm:$0xff] %vm231_vm2, %v1023_v51  ;;  %1119 = vst.msk [vmem:[%s1714_s7 + $0x60] sm:$0xff] %vm231_vm2, %v1063_v23  ;;  %vm1010_vm9 = vcmp.gt.f32.partialorder %v1002_v50, 0.0  ;;  %v1018_v58 = vmul.f32 0.01, %v1002_v50  ;;  %vm1050_vm10 = vcmp.gt.f32.partialorder %v1042_v54, 0.0 }
 0x448   :  { %v1058_v59 = vmul.f32 0.01, %v1042_v54  ;;  %vm1009_vm11 = vcmp.gt.f32.partialorder %v1001_v28, 0.0  ;;  %v1017_v61 = vmul.f32 0.01, %v1001_v28 }
 0x449   :  { %vm1049_vm12 = vcmp.gt.f32.partialorder %v1041_v55, 0.0  ;;  %v1057_v62 = vmul.f32 0.01, %v1041_v55  ;;  %v1026_v1 = vsel %vm1010_vm9, %v1002_v50, %v1018_v58 }
 0x44a   :  { %v1066_v2 = vsel %vm1050_vm10, %v1042_v54, %v1058_v59  ;;  %v1025_v3 = vsel %vm1009_vm11, %v1001_v28, %v1017_v61  ;;  %1074 = vst.msk [vmem:[%s1714_s7 + $0x38] sm:$0xff] %vm231_vm2, %v1026_v1 }
 0x44b   :  { %v1065_v4 = vsel %vm1049_vm12, %v1041_v55, %v1057_v62  ;;  %1122 = vst.msk [vmem:[%s1714_s7 + $0x78] sm:$0xff] %vm231_vm2, %v1066_v2  ;;  %1073 = vst.msk [vmem:[%s1714_s7 + $0x30] sm:$0xff] %vm231_vm2, %v1025_v3 }
 0x44c   :  { %1121 = vst.msk [vmem:[%s1714_s7 + $0x70] sm:$0xff] %vm231_vm2, %v1065_v4 }

</bundles_post_ra>
